<compile_context>
chip_gen: v7x
topology: tpu7x:2x2x1
jax: 0.10.0
libtpu: 0.0.40
codegen_flags: <defaults>
</compile_context>

<pallas_src>
import functools

import jax
import jax.numpy as jnp
from jax import lax
from jax.experimental import pallas as pl
from jax.experimental.pallas import tpu as pltpu

_LANES = 128


def _loss_tile(seg_ref, msk_ref):
    """Per-element 2-class CE on one tile.

    seg_ref: (2, bS, 128) logits.  msk_ref: (bS, 128) ground-truth mask.
    CE = logsumexp(x0, x1) - x[label] = softplus(x[1-label] - x[label]),
    computed stably with a single exp + single log.
    """
    x0 = seg_ref[0].astype(jnp.float32)
    x1 = seg_ref[1].astype(jnp.float32)
    m = msk_ref[...]
    # .long() truncation of a non-negative (possibly bilinear-resized) mask:
    # label == 1 exactly where the mask value is >= 1.
    lbl1 = m if m.dtype == jnp.bool_ else (m >= 1)
    d = jnp.where(lbl1, x0 - x1, x1 - x0)
    # softplus(d): exp argument is <= 0, never overflows.
    return jnp.maximum(d, 0.0) + jnp.log(1.0 + jnp.exp(-jnp.abs(d)))


def _sum_kernel(seg_ref, msk_ref, out_ref, *, bs, blocks_per_part, hw, need_mask):
    """Mean mode: accumulate tile sums into a small resident (acc_rows,128) block."""
    pp = pl.program_id(1)          # megacore partition of the column-block axis
    cc = pl.program_id(2)          # reduction ("arbitrary") axis
    loss = _loss_tile(seg_ref, msk_ref)                      # (bs, 128) f32

    if need_mask:
        # Zero contributions from: lane padding (HW%128), ragged last block,
        # and clamped duplicate blocks of an uneven megacore split.
        tile_start = (pp * blocks_per_part + cc) * bs
        sub = lax.broadcasted_iota(jnp.int32, loss.shape, 0)
        lane = lax.broadcasted_iota(jnp.int32, loss.shape, 1)
        flat = (tile_start + sub) * _LANES + lane
        loss = jnp.where(flat < hw, loss, jnp.float32(0.0))

    if bs % 8 == 0 and bs > 8:
        # Dense sublane-group reduce (pure VPU adds) before touching the
        # accumulator: cuts accumulator load/store traffic ~bs/8 x.
        loss = jnp.sum(loss.reshape(bs // 8, 8, _LANES), axis=0)   # (8, 128)

    @pl.when(cc == 0)
    def _():
        out_ref[...] = jnp.zeros_like(out_ref)

    out_ref[...] += loss


def _map_kernel(seg_ref, msk_ref, out_ref):
    """Per-element mode: write the dense (bS,128) loss tile."""
    out_ref[...] = _loss_tile(seg_ref, msk_ref)


def _seg_loss_pallas(seg4, msk4, hw, reduce_mean, max_bs):
    """seg4: (N, 2, T, 128) logits, msk4: (N, 1, T, 128) mask, T = ceil(HW/128)."""
    n, _, t, _ = seg4.shape
    max_bs = max(8, (max_bs // 8) * 8)
    bs = t if t <= max_bs else max_bs          # full dim or a multiple of 8
    nblk = pl.cdiv(t, bs)

    seg_block = (None, 2, bs, _LANES)          # kernel ref: (2, bs, 128)
    msk_block = (None, None, bs, _LANES)       # kernel ref: (bs, 128)

    if reduce_mean:
        p = 2 if nblk >= 2 else 1              # megacore split of the reduction
        c = pl.cdiv(nblk, p)
        acc_rows = 8 if (bs % 8 == 0 and bs > 8) else bs
        need_mask = (t * _LANES != hw) or (nblk * bs != t) or (p * c != nblk)

        def in_map(i, pp, cc):
            blk = pp * c + cc
            if p * c != nblk:                  # uneven split: clamp, mask in-kernel
                blk = jnp.minimum(blk, nblk - 1)
            return (i, 0, blk, 0)

        kernel = functools.partial(_sum_kernel, bs=bs, blocks_per_part=c,
                                   hw=hw, need_mask=need_mask)
        # Per-step VMEM (double-buffered): ~2*(2+1)*bs*128*4B <= ~6 MiB at
        # bs=2048 -> fits the default scoped VMEM on v5e/v6e/v7x.
        return pl.pallas_call(
            kernel,
            grid=(n, p, c),
            in_specs=[pl.BlockSpec(seg_block, in_map),
                      pl.BlockSpec(msk_block, in_map)],
            out_specs=pl.BlockSpec((None, None, acc_rows, _LANES),
                                   lambda i, pp, cc: (i, pp, 0, 0)),
            out_shape=jax.ShapeDtypeStruct((n, p, acc_rows, _LANES), jnp.float32),
            compiler_params=pltpu.CompilerParams(
                dimension_semantics=("parallel", "parallel", "arbitrary")),
        )(seg4, msk4)

    # Per-element (reduce=False) mode: all axes independent.
    return pl.pallas_call(
        _map_kernel,
        grid=(n, nblk),
        in_specs=[pl.BlockSpec(seg_block, lambda i, cc: (i, 0, cc, 0)),
                  pl.BlockSpec(msk_block, lambda i, cc: (i, 0, cc, 0))],
        out_specs=pl.BlockSpec((None, bs, _LANES), lambda i, cc: (i, cc, 0)),
        out_shape=jax.ShapeDtypeStruct((n, t, _LANES), jnp.float32),
        compiler_params=pltpu.CompilerParams(
            dimension_semantics=("parallel", "parallel")),
    )(seg4, msk4)


def seg_loss(seg_mask, gts_masks, bool_, max_block_sublanes=2048):
    """SegLoss.forward equivalent (non-list tensor case).

    seg_mask : (N, 2, H, W) float logits (NCHW, 2 classes)
    gts_masks: (N, 1, Hg, Wg) binary ground-truth mask (NCHW)
    bool_    : True  -> scalar mean loss (F.cross_entropy reduce=True)
               False -> per-element loss vector of shape (N*H*W,)
    """
    n, two, h, w = seg_mask.shape
    assert two == 2

    if gts_masks.shape[2] != h or gts_masks.shape[3] != w:
        # TODO(synk): jax.image.resize(bilinear) approximates PyTorch
        # interpolate(mode='bilinear', align_corners=None); not bit-exact at
        # resized boundaries.
        global_mask = jax.image.resize(
            gts_masks.astype(jnp.float32), (n, gts_masks.shape[1], h, w),
            method="bilinear", antialias=False)
    else:
        global_mask = gts_masks
        if global_mask.dtype.itemsize != 4:
            # Narrow mask dtypes would need sub-32-bit-aware tiling; upcast.
            global_mask = global_mask.astype(jnp.float32)

    hw = h * w
    l = ((hw + _LANES - 1) // _LANES) * _LANES
    seg3 = seg_mask.reshape(n, 2, hw)                 # free reshapes
    msk3 = global_mask.reshape(n, 1, hw)
    if l != hw:
        # Only when H*W is not a multiple of 128; padded lanes are masked /
        # sliced off downstream.
        seg3 = jnp.pad(seg3, ((0, 0), (0, 0), (0, l - hw)))
        msk3 = jnp.pad(msk3, ((0, 0), (0, 0), (0, l - hw)))
    t = l // _LANES
    seg4 = seg3.reshape(n, 2, t, _LANES)              # free: splits the last dim
    msk4 = msk3.reshape(n, 1, t, _LANES)

    out = _seg_loss_pallas(seg4, msk4, hw, bool(bool_), max_block_sublanes)
    if bool_:
        return jnp.sum(out) / jnp.float32(n * hw)
    loss_map = out.reshape(n, l)
    if l != hw:
        loss_map = loss_map[:, :hw]
    return loss_map.reshape(-1)

    # TODO(synk): list-input branch of SegLoss.forward not implemented (the
    # original PyTorch code calls cross_entropy with a missing argument there).


if __name__ == "__main__":
    def ref_seg_loss(seg_mask, gts_masks, bool_):
        # Pure-JAX reference matching F.cross_entropy on permuted/flattened logits.
        n, _, h, w = seg_mask.shape
        if gts_masks.shape[2] != h or gts_masks.shape[3] != w:
            gm = jax.image.resize(gts_masks.astype(jnp.float32),
                                  (n, gts_masks.shape[1], h, w),
                                  method="bilinear", antialias=False)
        else:
            gm = gts_masks.astype(jnp.float32)
        logits = jnp.transpose(seg_mask, (0, 2, 3, 1)).reshape(-1, 2).astype(jnp.float32)
        lbls = gm.astype(jnp.int32).reshape(-1)
        vec = jax.nn.logsumexp(logits, axis=-1) - jnp.take_along_axis(
            logits, lbls[:, None], axis=-1)[:, 0]
        return jnp.mean(vec) if bool_ else vec

    key = jax.random.PRNGKey(0)
    configs = [
        # (N, H, W, gts_H, gts_W, max_block_sublanes)
        (2, 16, 16, 16, 16, 2048),   # HW % 128 == 0, single block per row
        (2, 48, 48, 48, 48, 16),     # ragged last block + sublane-group reduce + megacore split
        (2, 48, 48, 48, 48, 8),      # odd block count -> clamped duplicate block path
        (1, 10, 13, 10, 13, 2048),   # HW % 128 != 0 -> pad + in-kernel lane masking
        (2, 16, 16, 32, 32, 2048),   # bilinear resize path for the GT mask
    ]
    for (n, h, w, gh, gw, mbs) in configs:
        key, k1, k2 = jax.random.split(key, 3)
        seg_mask = jax.random.normal(k1, (n, 2, h, w), dtype=jnp.float32)
        gts = (jax.random.uniform(k2, (n, 1, gh, gw)) > 0.5).astype(jnp.float32)

        got_mean = jax.block_until_ready(
            seg_loss(seg_mask, gts, True, max_block_sublanes=mbs))
        got_vec = jax.block_until_ready(
            seg_loss(seg_mask, gts, False, max_block_sublanes=mbs))
        ref_mean = ref_seg_loss(seg_mask, gts, True)
        ref_vec = ref_seg_loss(seg_mask, gts, False)

        assert got_vec.shape == (n * h * w,), (got_vec.shape, (n, h, w, mbs))
        assert jnp.allclose(got_vec, ref_vec, atol=1e-5, rtol=1e-5), (n, h, w, mbs)
        assert jnp.allclose(got_mean, ref_mean, atol=1e-5, rtol=1e-5), (n, h, w, mbs)

    print("KERNEL_OK")
</pallas_src>

<mosaic_0001>
module attributes {stable_mosaic.version = 11 : i64} {
  func.func @_sum_kernel(%arg0: i32, %arg1: i32, %arg2: i32, %arg3: memref<1x2x2x128xf32, #tpu.memory_space<vmem>>, %arg4: memref<1x1x2x128xf32, #tpu.memory_space<vmem>>, %arg5: memref<1x1x2x128xf32, #tpu.memory_space<vmem>>) attributes {dimension_semantics = [#tpu.dimension_semantics<parallel>, #tpu.dimension_semantics<parallel>, #tpu.dimension_semantics<arbitrary>], iteration_bounds = array<i64: 2, 1, 1>, scalar_prefetch = 0 : i64, scratch_operands = 0 : i64, tpu.core_type = #tpu.core_type<tc>, window_params = [{transform_indices = @transform_0, window_bounds = array<i64: 1, 2, 2, 128>}, {transform_indices = @transform_1, window_bounds = array<i64: 1, 1, 2, 128>}, {transform_indices = @transform_2, window_bounds = array<i64: 1, 1, 2, 128>}]} {
    %c0 = arith.constant 0 : index
    %c0_0 = arith.constant 0 : index
    %c0_1 = arith.constant 0 : index
    %c0_2 = arith.constant 0 : index
    %0 = vector.load %arg3[%c0, %c0_0, %c0_1, %c0_2] : memref<1x2x2x128xf32, #tpu.memory_space<vmem>>, vector<1x1x2x128xf32>
    %1 = vector.shape_cast %0 : vector<1x1x2x128xf32> to vector<2x128xf32>
    %c0_3 = arith.constant 0 : index
    %c1 = arith.constant 1 : index
    %c0_4 = arith.constant 0 : index
    %c0_5 = arith.constant 0 : index
    %2 = vector.load %arg3[%c0_3, %c1, %c0_4, %c0_5] : memref<1x2x2x128xf32, #tpu.memory_space<vmem>>, vector<1x1x2x128xf32>
    %3 = vector.shape_cast %2 : vector<1x1x2x128xf32> to vector<2x128xf32>
    %c0_6 = arith.constant 0 : index
    %c0_7 = arith.constant 0 : index
    %c0_8 = arith.constant 0 : index
    %c0_9 = arith.constant 0 : index
    %4 = vector.load %arg4[%c0_6, %c0_7, %c0_8, %c0_9] : memref<1x1x2x128xf32, #tpu.memory_space<vmem>>, vector<1x1x2x128xf32>
    %5 = vector.shape_cast %4 : vector<1x1x2x128xf32> to vector<2x128xf32>
    %cst = arith.constant 1.000000e+00 : f32
    %6 = vector.broadcast %cst : f32 to vector<2x128xf32>
    %7 = arith.cmpf oge, %5, %6 : vector<2x128xf32>
    %8 = arith.subf %1, %3 : vector<2x128xf32>
    %9 = arith.subf %3, %1 : vector<2x128xf32>
    %10 = arith.select %7, %8, %9 : vector<2x128xi1>, vector<2x128xf32>
    %cst_10 = arith.constant 0.000000e+00 : f32
    %11 = vector.broadcast %cst_10 : f32 to vector<2x128xf32>
    %12 = arith.maximumf %10, %11 : vector<2x128xf32>
    %13 = math.absf %10 : vector<2x128xf32>
    %cst_11 = arith.constant 0.000000e+00 : f32
    %14 = vector.broadcast %cst_11 : f32 to vector<2x128xf32>
    %15 = arith.subf %14, %13 : vector<2x128xf32>
    %16 = math.exp %15 : vector<2x128xf32>
    %cst_12 = arith.constant 1.000000e+00 : f32
    %17 = vector.broadcast %cst_12 : f32 to vector<2x128xf32>
    %18 = arith.addf %17, %16 : vector<2x128xf32>
    %19 = math.log %18 : vector<2x128xf32>
    %20 = arith.addf %12, %19 : vector<2x128xf32>
    %c0_i32 = arith.constant 0 : i32
    %21 = arith.cmpi eq, %arg2, %c0_i32 : i32
    %22 = arith.extui %21 : i1 to i32
    %c0_i32_13 = arith.constant 0 : i32
    %23 = arith.cmpi ne, %22, %c0_i32_13 : i32
    scf.if %23 {
      %cst_22 = arith.constant 0.000000e+00 : f32
      %30 = vector.broadcast %cst_22 : f32 to vector<2x128xf32>
      %c0_23 = arith.constant 0 : index
      %c0_24 = arith.constant 0 : index
      %c0_25 = arith.constant 0 : index
      %c0_26 = arith.constant 0 : index
      %31 = vector.load %arg5[%c0_23, %c0_24, %c0_25, %c0_26] : memref<1x1x2x128xf32, #tpu.memory_space<vmem>>, vector<1x1x2x128xf32>
      %32 = vector.shape_cast %31 : vector<1x1x2x128xf32> to vector<2x128xf32>
      %33 = vector.shape_cast %30 : vector<2x128xf32> to vector<1x1x2x128xf32>
      tpu.vector_store %arg5[%c0_23, %c0_24, %c0_25, %c0_26], %33 {strides = array<i32>} : memref<1x1x2x128xf32, #tpu.memory_space<vmem>>, vector<1x1x2x128xf32>,
    } else {
    }
    %c0_14 = arith.constant 0 : index
    %c0_15 = arith.constant 0 : index
    %c0_16 = arith.constant 0 : index
    %c0_17 = arith.constant 0 : index
    %24 = vector.load %arg5[%c0_14, %c0_15, %c0_16, %c0_17] : memref<1x1x2x128xf32, #tpu.memory_space<vmem>>, vector<1x1x2x128xf32>
    %25 = vector.shape_cast %24 : vector<1x1x2x128xf32> to vector<2x128xf32>
    %26 = arith.addf %25, %20 : vector<2x128xf32>
    %c0_18 = arith.constant 0 : index
    %c0_19 = arith.constant 0 : index
    %c0_20 = arith.constant 0 : index
    %c0_21 = arith.constant 0 : index
    %27 = vector.load %arg5[%c0_18, %c0_19, %c0_20, %c0_21] : memref<1x1x2x128xf32, #tpu.memory_space<vmem>>, vector<1x1x2x128xf32>
    %28 = vector.shape_cast %27 : vector<1x1x2x128xf32> to vector<2x128xf32>
    %29 = vector.shape_cast %26 : vector<2x128xf32> to vector<1x1x2x128xf32>
    tpu.vector_store %arg5[%c0_18, %c0_19, %c0_20, %c0_21], %29 {strides = array<i32>} : memref<1x1x2x128xf32, #tpu.memory_space<vmem>>, vector<1x1x2x128xf32>,
    return
  }
  func.func @transform_0(%arg0: i32, %arg1: i32, %arg2: i32) -> (i32, i32, i32, i32) {
    %c1_i32 = arith.constant 1 : i32
    %0 = arith.muli %arg1, %c1_i32 : i32
    %1 = arith.addi %0, %arg2 : i32
    %c0_i32 = arith.constant 0 : i32
    %c0_i32_0 = arith.constant 0 : i32
    %c0_i32_1 = arith.constant 0 : i32
    return %arg0, %c0_i32, %1, %c0_i32_0 : i32, i32, i32, i32
  }
  func.func @transform_1(%arg0: i32, %arg1: i32, %arg2: i32) -> (i32, i32, i32, i32) {
    %c1_i32 = arith.constant 1 : i32
    %0 = arith.muli %arg1, %c1_i32 : i32
    %1 = arith.addi %0, %arg2 : i32
    %c0_i32 = arith.constant 0 : i32
    %c0_i32_0 = arith.constant 0 : i32
    %c0_i32_1 = arith.constant 0 : i32
    return %arg0, %c0_i32, %1, %c0_i32_0 : i32, i32, i32, i32
  }
  func.func @transform_2(%arg0: i32, %arg1: i32, %arg2: i32) -> (i32, i32, i32, i32) {
    %c0_i32 = arith.constant 0 : i32
    %c0_i32_0 = arith.constant 0 : i32
    %c0_i32_1 = arith.constant 0 : i32
    return %arg0, %arg1, %c0_i32, %c0_i32_0 : i32, i32, i32, i32
  }
}

</mosaic_0001>

<bundles_post_ra>
// kernel: tpu_custom_call.1
= control target key start
LH: loop header
LB: loop body
LE: loop exit
PB: predicated region body
PF: predicated region fallthrough
CT: control target
= control target key end

     0   :  { %7 = vsyncpa [#allocation3], 0  ;;  %s861_s0 = inlined_call_operand.hbm [shape: f32[2,2,2,128], index: 0, kind: input, shape index: {}]   ;;  %s862_s1 = inlined_call_operand.hbm [shape: f32[2,1,2,128], index: 1, kind: input, shape index: {}]   ;;  %s863_s2 = inlined_call_operand.hbm [shape: f32[2,1,2,128], index: 2, kind: output, shape index: {}]  }
   0x1   :  { %9 = vsyncpa [#allocation3 + $0x1], 0 }
   0x2   :  { %10 = vsyncpa [#allocation6], 0 }
   0x3   :  { %12 = vsyncpa [#allocation6 + $0x1], 0 }
   0x4   :  { %13 = vsyncpa [#allocation4], 0 }
   0x5   :  { %15 = vsyncpa [#allocation4 + $0x1], 0  ;;  %s646_s9 = smov 0   ;;  %s648_s10 = smov 0  }
   0x6   :  { %s650_s11 = smov 0   ;;  %s652_s12 = smov 0  }
   0x7   :  { %s654_s13 = smov 0   ;;  %s656_s14 = smov 0  }
   0x8 LB: > { %s384_s15 = sadd.s32 4294967295, %s623_s14   ;;  %s385_s16 = sadd.s32 4294967294, %s623_s14   ;;  %s623_s14 = sphi %s656_s14, %s21_s14   ;;  %s619_s13 = sphi %s654_s13, %s882_s13   ;;  %s615_s12 = sphi %s652_s12, %s881_s12   ;;  %s611_s11 = sphi %s650_s11, %s880_s11   ;;  %s607_s10 = sphi %s648_s10, %s879_s10   ;;  %s603_s9 = sphi %s646_s9, %s878_s9  }
   0x9   : > { %s40_s17 = sadd.s32 1, %s619_s13  ;;  %s51_s18 = sadd.s32 1, %s611_s11 }
   0xa   : > { %p42_p0 = scmp.ge.s32.totalorder %s40_s17, 2  ;;  %p58_p1 = scmp.ne.s32.totalorder %s611_s11, %s607_s10 }
   0xb   : > { %p59_p2 = scmp.eq.s32.totalorder %s623_s14, 0  ;;  %p64_p3 = scmp.ne.s32.totalorder %s607_s10, %s603_s9 }
   0xc   : > { %s884_s17 = smov (%p42_p0, %s40_s17), 0  ;;  %p65_p5 = scmp.eq.s32.totalorder %s384_s15, 0 }
   0xd   : > { %p687_p4 = por %p59_p2, %p58_p1  ;;  %s46_s20 = ssub.s32 %s619_s13, %s884_s17 }
   0xe   : > { %p120_p6 = scmp.eq.s32.totalorder %s384_s15, 1  ;;  %p49_p7 = scmp.eq.s32.totalorder %s46_s20, 0 }
   0xf   : > { %p693_p8 = por %p65_p5, %p64_p3  ;;  %p126_p10 = scmp.eq.s32.totalorder %s385_s16, 1 }
  0x10   : > { %p697_p9 = por %p120_p6, %p58_p1  ;;  %p420_p13 = scmp.lt.s32.totalorder %s623_s14, 2 }
  0x11   : > { %s867_s21 = scalar_select %p693_p8, 1, 0 }
  0x12   : > { %s868_s22 = scalar_select %p697_p9, 1, 0 }
  0x13   : > { %s702_s23 = scalar_select %p49_p7, %s611_s11, %s51_s18  }
  0x14   : > { %p704_p11 = por %p126_p10, %p64_p3  ;;  %s711_s25 = sand.u32 1, %s611_s11  }
  0x15   : > { %s388_s26 = sshll.u32 %s711_s25, 2  ;;  %s402_s27 = sshll.u32 %s619_s13, 6 }
  0x16   : > { %s869_s24 = scalar_select %p704_p11, 1, 0 }
  0x17   : > { %s718_s30 = scalar_lea.hbm %s861_s0, %s402_s27  ;;  %s150_s3 = scalar_lea.vmem [#allocation2], %s388_s26 }
  0x18   : > { %s159_s4 = sshll.u32 %s150_s3, 4  ;;  %p724_p0 = pnand %p420_p13, %p687_p4  ;;  %s720_s4 = int_to_ptr.vmem [resolvable:$true] %s159_s4 }
  0x19   : > { %s147_s6 = scalar_lea.sflag [#allocation3], %s711_s25  ;;  %s477_s7 = scalar_lea.hbm %s718_s30, 64 }
  0x1a   : > { %p478_p2 = scmp.ne.s32.totalorder %s718_s30, %s477_s7  ;;  %p479_p3 = pneg %p724_p0 }
  0x1b   : > { %s482_s16 = scalar_lea.hbm %s861_s0, 128  ;;  %p483_p4 = scmp.lt.u32.totalorder %s718_s30, %s861_s0 }
  0x1c   : > { %p480_p5 = pnand %p479_p3, %p478_p2  ;;  %p484_p7 = scmp.lt.u32.totalorder %s482_s16, %s477_s7 }
  0x1d   : > { %p486_p13 = scmp.lt.u32.totalorder %s477_s7, %s718_s30 }
  0x1e   : > { %p481_p6 = pneg %p480_p5  ;;  %p485_p10 = por %p484_p7, %p483_p4 }
  0x20   : > { %p487_p12 = por %p486_p13, %p485_p10 }
  0x22   : > { %p488_p1 = pnand %p487_p12, %p481_p6 }
  0x24   : > { %491 = shalt.err (!%p488_p1)
}
  0x25   : > { %s492_s20 = scalar_lea.vmem %s720_s4, 64  ;;  %s625_s26 = smov [#allocation2]  }
  0x26   : > { %p493_p2 = scmp.ne.s32.totalorder %s720_s4, %s492_s20  ;;  %s497_s27 = sshll.u32 %s625_s26, 4  ;;  %s498_s27 = int_to_ptr.vmem [resolvable:$false] %s497_s27 }
  0x27   : > { %s499_s28 = scalar_lea.vmem %s498_s27, 128  ;;  %p500_p9 = scmp.lt.s32.totalorder %s720_s4, %s498_s27 }
  0x28   : > { %p495_p5 = pnand %p493_p2, %p479_p3  ;;  %p501_p4 = scmp.lt.s32.totalorder %s499_s28, %s492_s20 }
  0x2a   : > { %p496_p11 = pneg %p495_p5  ;;  %p502_p7 = por %p501_p4, %p500_p9 }
  0x2c   : > { %p503_p10 = pnand %p502_p7, %p496_p11 }
  0x2e   : > { %506 = shalt.err (!%p503_p10)
}
  0x2f   : > { %s626_s29 = smov 32   ;;  %s627_s3 = smov 2  }
  0x30   : > { %412 = dma.hbm_to_vmem [thread:$0]  (!%p724_p0), %s718_s30, 64, %s720_s4, %s147_s6, %s626_s29, %s626_s29, %s627_s3  }
  0x31   : > { %p187_p12 = scmp.lt.s32.totalorder %s623_s14, 3  ;;  %s391_s7 = sshll.u32 %s711_s25, 1 }
  0x32   : > { %s392_s8 = sshll.u32 %s619_s13, 5  ;;  %p871_p9 = scmp.ge.s32.totalorder %s623_s14, 1 }
  0x33   : > { %s769_s19 = scalar_lea.hbm %s862_s1, %s392_s8  ;;  %s173_s20 = scalar_lea.vmem [#allocation5], %s391_s7 }
  0x34   : > { %p762_p11 = pnand %p871_p9, %p187_p12  ;;  %s182_s26 = sshll.u32 %s173_s20, 4  ;;  %s183_s26 = int_to_ptr.vmem [resolvable:$true] %s182_s26 }
  0x35   : > { %s170_s30 = scalar_lea.sflag [#allocation6], %s711_s25  ;;  %s507_s4 = scalar_lea.hbm %s769_s19, 32 }
  0x36   : > { %s872_s15 = scalar_select %p762_p11, 1, 0 }
  0x37   : > { %p508_p1 = scmp.ne.s32.totalorder %s769_s19, %s507_s4  ;;  %s512_s28 = scalar_lea.hbm %s862_s1, 64 }
  0x38   : > { %p513_p2 = scmp.lt.u32.totalorder %s769_s19, %s862_s1  ;;  %p514_p5 = scmp.lt.u32.totalorder %s512_s28, %s507_s4 }
  0x39   : > { %p510_p6 = pnand %p508_p1, %p479_p3  ;;  %p516_p7 = scmp.lt.u32.totalorder %s507_s4, %s769_s19 }
  0x3a   : > { %p515_p4 = por %p514_p5, %p513_p2 }
  0x3b   : > { %p511_p13 = pneg %p510_p6 }
  0x3c   : > { %p517_p10 = por %p516_p7, %p515_p4 }
  0x3e   : > { %p518_p12 = pnand %p517_p10, %p511_p13 }
  0x40   : > { %521 = shalt.err (!%p518_p12)
}
  0x41   : > { %s522_s25 = scalar_lea.vmem %s183_s26, 32  ;;  %s628_s7 = smov [#allocation5]  }
  0x42   : > { %p523_p9 = scmp.ne.s32.totalorder %s183_s26, %s522_s25  ;;  %s527_s8 = sshll.u32 %s628_s7, 4  ;;  %s528_s8 = int_to_ptr.vmem [resolvable:$false] %s527_s8 }
  0x43   : > { %s529_s16 = scalar_lea.vmem %s528_s8, 64  ;;  %p530_p8 = scmp.lt.s32.totalorder %s183_s26, %s528_s8 }
  0x44   : > { %p525_p1 = pnand %p523_p9, %p479_p3  ;;  %p531_p11 = scmp.lt.s32.totalorder %s529_s16, %s522_s25 }
  0x46   : > { %p526_p6 = pneg %p525_p1  ;;  %p532_p2 = por %p531_p11, %p530_p8 }
  0x48   : > { %p533_p5 = pnand %p532_p2, %p526_p6 }
  0x4a   : > { %536 = shalt.err (!%p533_p5)
}
  0x4b   : > { %415 = dma.hbm_to_vmem [thread:$0]  (!%p724_p0), %s769_s19, 32, %s183_s26, %s170_s30  }
  0x4c   : > { %p873_p13 = scmp.ne.s32.totalorder %s872_s15, 0 }
  0x4d   : > { %s794_s18 = sand.u32 (!%p873_p13), 1, %s607_s10   ;;  %p874_p3 = scmp.ne.s32.totalorder (!%p873_p13), %s867_s21, 0 }
  0x4e   : > { %191 = sbr.rel (%p873_p13) target bundleno = 144 (0x90), region = 28  ;;  %s394_s20 = sshll.u32 (!%p873_p13), %s794_s18, 2 }
  0x4f   : > { %s194_s4 = scalar_lea.sflag (!%p873_p13), [#allocation3], %s794_s18  ;;  %s197_s6 = scalar_lea.vmem (!%p873_p13), [#allocation2], %s394_s20 }
  0x55   : > { %590 = dma.done.wait (%p874_p3), %s194_s4, 64  }
  0x56   : > { %592 = vsyncadd (%p874_p3), %s194_s4, 4294967232  ;;  %s395_s5 = sshll.u32 %s794_s18, 1  ;;  %s203_s15 = scalar_lea.sflag [#allocation6], %s794_s18 }
  0x57   : > { %s206_s19 = scalar_lea.vmem [#allocation5], %s395_s5 }
  0x58   : > { %594 = dma.done.wait (%p874_p3), %s203_s15, 32  }
  0x59   : > { %596 = vsyncadd (%p874_p3), %s203_s15, 4294967264  ;;  %s231_s26 = scalar_lea.vmem [#allocation7], %s395_s5  ;;  %v629_v0 = vmov 0.0   ;;  %v234_v1 = vld [vmem:[%s197_s6] sm:$0x3]  ;;  %s399_s21 = sshll.u32 %s615_s12, 5 }
  0x5a   : > { %255 = vst [vmem:[%s231_s26] sm:$0x3] %v629_v0  ;;  %v397_v2 = vld [vmem:[%s197_s6 + $0x2] sm:$0x3]  ;;  %v237_v3 = vld [vmem:[%s206_s19] sm:$0x3]  ;;  %s274_s30 = sshll.u32 %s231_s26, 4  ;;  %s812_s29 = scalar_lea.hbm %s863_s2, %s399_s21  ;;  %s814_s30 = int_to_ptr.vmem [resolvable:$true] %s274_s30 }
  0x5b   : > { %vm238_vm0 = vcmp.ge.f32.partialorder %v237_v3, 1.0  ;;  %v239_v4 = vsub.f32 %v234_v1, %v397_v2  ;;  %v240_v5 = vsub.f32 %v397_v2, %v234_v1  ;;  %s260_s3 = scalar_lea.sflag [#allocation4], %s794_s18  ;;  %s537_s25 = scalar_lea.vmem %s814_s30, 32 }
  0x5c   : > { %p538_p8 = scmp.ne.s32.totalorder %s814_s30, %s537_s25  ;;  %p875_p0 = scmp.ne.s32.totalorder %s868_s22, 0 }
  0x5d   : > { %v241_v6 = vsel %vm238_vm0, %v239_v4, %v240_v5  ;;  %s630_s12 = smov [#allocation7]  }
  0x5e   : > { %v243_v7 = vand.u32 2147483647, %v241_v6  ;;  %v242_v12 = vmax.f32 %v241_v6, 0.0  ;;  %p539_p11 = pnand %p538_p8, %p875_p0  ;;  %s541_s7 = sshll.u32 %s630_s12, 4  ;;  %s542_s7 = int_to_ptr.vmem [resolvable:$false] %s541_s7 }
  0x5f   : > { %s543_s8 = scalar_lea.vmem %s542_s7, 64  ;;  %p544_p7 = scmp.lt.s32.totalorder %s814_s30, %s542_s7 }
  0x60   : > { %v244_v8 = vsub.f32 0.0, %v243_v7  ;;  %p540_p4 = pneg %p539_p11  ;;  %p545_p10 = scmp.lt.s32.totalorder %s543_s8, %s537_s25 }
  0x61   : > { %v256_v15 = vld [vmem:[%s231_s26] sm:$0x3] }
  0x62   : > { %v245_v9 = vmul.f32 1.442695, %v244_v8  ;;  %p546_p12 = por %p545_p10, %p544_p7 }
  0x64   : > { %473 = vpow2.f32 %v245_v9  ;;  %p547_p9 = pnand %p546_p12, %p540_p4 }
  0x6e   : > { %v474_v10 = vpop.eup %473 }
  0x6f   : > { %v247_v11 = vadd.f32 1.0, %v474_v10 }
  0x71   : > { %475 = vlog2.f32 %v247_v11 }
  0x7b   : > { %v476_v13 = vpop.eup %475 }
  0x7c   : > { %v249_v14 = vmul.f32 0.6931472, %v476_v13 }
  0x7e   : > { %v250_v16 = vadd.f32 %v249_v14, %v242_v12 }
  0x80   : > { %v257_v17 = vadd.f32 %v256_v15, %v250_v16 }
  0x82   : > { %258 = vst [vmem:[%s231_s26] sm:$0x3] %v257_v17 }
  0x83   : > { %550 = shalt.err (!%p547_p9)
}
  0x84   : > { %s551_s16 = scalar_lea.hbm %s812_s29, 32  ;;  %s555_s4 = scalar_lea.hbm %s863_s2, 64 }
  0x85   : > { %p552_p1 = scmp.ne.s32.totalorder %s812_s29, %s551_s16  ;;  %p556_p5 = scmp.lt.u32.totalorder %s812_s29, %s863_s2 }
  0x86   : > { %p557_p13 = scmp.lt.u32.totalorder %s555_s4, %s551_s16  ;;  %p559_p8 = scmp.lt.u32.totalorder %s551_s16, %s812_s29 }
  0x87   : > { %p553_p6 = pnand %p552_p1, %p875_p0 }
  0x88   : > { %p558_p3 = por %p557_p13, %p556_p5 }
  0x89   : > { %p554_p2 = pneg %p553_p6 }
  0x8a   : > { %p560_p11 = por %p559_p8, %p558_p3 }
  0x8c   : > { %p561_p4 = pnand %p560_p11, %p554_p2 }
  0x8e   : > { %564 = shalt.err (!%p561_p4)
}
  0x8f   : > { %407 = dma.vmem_to_hbm [thread:$0]  (%p875_p0), %s814_s30, 32, %s812_s29, %s260_s3  }
  0x90 PF: > { %s286_s15 = sand.u32 1, %s603_s9   ;;  %p876_p7 = scmp.ne.s32.totalorder %s869_s24, 0 }
  0x91   : > { %p877_p10 = scmp.ge.s32.totalorder %s623_s14, 2  ;;  %s287_s19 = scalar_lea.sflag [#allocation4], %s286_s15 }
  0x93   : > { %p417_p12 = pnand %p877_p10, %p876_p7 }
  0x95   : > { %598 = dma.done.wait (!%p417_p12), %s287_s19, 32  }
  0x96   : > { %600 = vsyncadd (!%p417_p12), %s287_s19, 4294967264  ;;  %s21_s14 = sadd.s32 1, %s623_s14   ;;  %s878_s9 = smov %s607_s10 }
  0x97   : > { %p18_p9 = scmp.ge.s32.totalorder %s21_s14, 4   ;;  %s879_s10 = smov %s611_s11 }
  0x98   : > { %s880_s11 = smov %s702_s23  ;;  %s881_s12 = smov %s619_s13 }
  0x99   : > { %s882_s13 = smov %s884_s17  ;;  %20 = sbr.rel (!%p18_p9) target bundleno = 8 (0x8), region = 91 }
  0xa0   :  { %292 = vsyncpa [#allocation3], 1 }
  0xa1   :  { %294 = vsyncpa [#allocation3 + $0x1], 1 }
  0xa2   :  { %295 = vsyncpa [#allocation6], 1 }
  0xa3   :  { %297 = vsyncpa [#allocation6 + $0x1], 1 }
  0xa4   :  { %298 = vsyncpa [#allocation4], 1 }
  0xa5   :  { %300 = vsyncpa [#allocation4 + $0x1], 1 }

</bundles_post_ra>
